<compile_context>
chip_gen: v6e
topology: v6e:2x2x1
jax: 0.10.0
libtpu: 0.0.40
codegen_flags: <defaults>
</compile_context>

<pallas_src>
import jax
import jax.numpy as jnp
from jax.experimental import pallas as pl
from jax.experimental.pallas import tpu as pltpu


def _mf_matmul_kernel(a_ref, b_ref, o_ref):
    """Full-K matmul tile: one MXU dot, one store. No accumulator needed."""
    # Default MXU precision matches jnp.dot's default (same numerics as the
    # jnp reference); pass precision=jax.lax.Precision.HIGHEST if exact f32
    # math is ever required by the module's precision contract.
    o_ref[...] = jnp.dot(
        a_ref[...], b_ref[...], preferred_element_type=jnp.float32
    ).astype(o_ref.dtype)


# Below this total footprint, run the whole problem as a single VMEM-resident
# block (no grid, no pipelining machinery).
_SMALL_PROBLEM_BYTES = 512 * 1024
# Double-buffered working set (A, B, out tiles) must fit this on all chips.
_VMEM_WORKING_BUDGET = 32 * 1024 * 1024
_VMEM_HEADROOM = 8 * 1024 * 1024
_VMEM_LIMIT_CAP = 48 * 1024 * 1024      # stays under v7x's 64 MiB physical VMEM
# Output-tile caps: big, lane-dense tiles amortize per-grid-step overhead.
_TM_CAP, _TN_CAP = 1024, 2048
_TM_MIN, _TN_MIN = 128, 256


def _align_up(x, a):
    return ((x + a - 1) // a) * a


def _num_tensorcores():
    """Best-effort TensorCores-per-chip (2 on v7x, 1 on v5e/v6e).

    Defaults to 1 so single-core chips never pay a useless grid split; on v7x
    a miss only forgoes the megacore split (no correctness impact).
    """
    try:
        info = pltpu.get_tpu_info()
        for attr in ("num_cores", "core_count", "num_tensorcores",
                     "tensorcore_count"):
            n = getattr(info, attr, None)
            if n is None:
                continue
            n = int(n)
            if 1 <= n <= 8:
                return n
    except Exception:
        pass
    return 1


def _even_core_split(extent, tile, num_cores, align):
    """Shrink `tile` (keeping `align`-alignment) so cdiv(extent, tile) becomes
    an equal-size multiple of num_cores. No-op for 1 core or when the split
    would not actually produce more, smaller tiles."""
    steps = pl.cdiv(extent, tile)
    if num_cores <= 1 or steps % num_cores == 0:
        return tile
    target = _align_up(steps, num_cores)
    new_tile = _align_up(pl.cdiv(extent, target), align)
    if align <= new_tile < tile:
        return new_tile
    return tile


def _pick_tiles(M, N, K, itemsize):
    """Choose (tm, tn) output-tile sizes for the tiled path."""
    # Full extents are always legal block dims; otherwise use large,
    # (8,128)-aligned, lane-dense tiles.
    tm = M if M <= _TM_CAP else _TM_CAP
    tn = N if N <= _TN_CAP else _TN_CAP

    def vmem_est(tm_, tn_):
        # A, B and output tiles, each double-buffered by the pipeline.
        return 2 * (tm_ * K + K * tn_ + tm_ * tn_) * itemsize

    # Shrink the larger tile dim (alignment-preserving) until the working set
    # fits the budget. Only relevant if K is unusually large.
    while vmem_est(tm, tn) > _VMEM_WORKING_BUDGET and (tm > _TM_MIN or tn > _TN_MIN):
        if tm >= tn and tm > _TM_MIN:
            tm = _align_up(max(_TM_MIN, tm // 2), 8)
        elif tn > _TN_MIN:
            tn = _align_up(max(_TN_MIN, tn // 2), 128)
        else:
            break

    if vmem_est(tm, tn) > _VMEM_WORKING_BUDGET:
        # TODO(synk): add a K-tiled accumulator variant if n_factors ever gets
        # this large; not expected for matrix factorization.
        raise ValueError(
            f"n_factors={K} too large for the full-K tiling of this kernel "
            f"(working set {vmem_est(tm, tn)} B > {_VMEM_WORKING_BUDGET} B)")
    return tm, tn


@jax.jit
def matrix_factorization_forward(row_factors, col_factors):
    M, K = row_factors.shape
    K2, N = col_factors.shape
    if K != K2:
        raise ValueError(f"inner dims must match, got {K} vs {K2}")

    out_dtype = row_factors.dtype
    itemsize = jnp.dtype(out_dtype).itemsize
    total_bytes = (M * K + K * N + M * N) * itemsize
    cost = pl.CostEstimate(
        flops=2 * M * N * K,
        transcendentals=0,
        bytes_accessed=total_bytes,
    )

    if total_bytes <= _SMALL_PROBLEM_BYTES:
        # Single-shot: whole problem lives in VMEM, no grid, no pipelining.
        return pl.pallas_call(
            _mf_matmul_kernel,
            out_shape=jax.ShapeDtypeStruct((M, N), out_dtype),
            in_specs=[
                pl.BlockSpec(memory_space=pltpu.MemorySpace.VMEM),
                pl.BlockSpec(memory_space=pltpu.MemorySpace.VMEM),
            ],
            out_specs=pl.BlockSpec(memory_space=pltpu.MemorySpace.VMEM),
            cost_estimate=cost,
        )(row_factors, col_factors)

    # Tiled path: 2-D grid over output tiles, full-K blocks (no accumulator).
    tm, tn = _pick_tiles(M, N, K, itemsize)
    num_cores = _num_tensorcores()

    gi, gj = pl.cdiv(M, tm), pl.cdiv(N, tn)
    # The operand whose block index changes along the inner grid axis is
    # re-fetched once per outer step; pick the order with less redundant DMA.
    redundant_b = (gi - 1) * K * N      # i outer, j inner: B re-streamed
    redundant_a = (gj - 1) * M * K      # j outer, i inner: A re-streamed
    i_outer = redundant_b <= redundant_a

    if i_outer:
        # Megacore (v7x): split the OUTER parallel axis evenly across cores.
        tm = _even_core_split(M, tm, num_cores, 8)
        grid = (pl.cdiv(M, tm), pl.cdiv(N, tn))
        a_spec = pl.BlockSpec((tm, K), lambda i, j: (i, 0))
        b_spec = pl.BlockSpec((K, tn), lambda i, j: (0, j))
        o_spec = pl.BlockSpec((tm, tn), lambda i, j: (i, j))
    else:
        tn = _even_core_split(N, tn, num_cores, 128)
        grid = (pl.cdiv(N, tn), pl.cdiv(M, tm))
        a_spec = pl.BlockSpec((tm, K), lambda j, i: (i, 0))
        b_spec = pl.BlockSpec((K, tn), lambda j, i: (0, j))
        o_spec = pl.BlockSpec((tm, tn), lambda j, i: (i, j))

    # Scoped-VMEM limit sized to the actual double-buffered working set.
    working_set = 2 * (tm * K + K * tn + tm * tn) * itemsize
    vmem_limit = max(16 << 20, min(working_set + _VMEM_HEADROOM, _VMEM_LIMIT_CAP))

    return pl.pallas_call(
        _mf_matmul_kernel,
        out_shape=jax.ShapeDtypeStruct((M, N), out_dtype),
        grid_spec=pltpu.PrefetchScalarGridSpec(
            num_scalar_prefetch=0,
            grid=grid,
            in_specs=[a_spec, b_spec],
            out_specs=o_spec,
        ),
        compiler_params=pltpu.CompilerParams(
            dimension_semantics=("parallel", "parallel"),
            vmem_limit_bytes=vmem_limit,
        ),
        cost_estimate=cost,
    )(row_factors, col_factors)


if __name__ == "__main__":
    key = jax.random.PRNGKey(0)
    k1, k2, k3, k4, k5, k6 = jax.random.split(key, 6)

    # 1) Toy shape matching the module spec (single-shot VMEM path).
    rows, cols, n_factors = 128, 256, 64
    row_factors = jax.random.normal(k1, (rows, n_factors), dtype=jnp.float32)
    col_factors = jax.random.normal(k2, (n_factors, cols), dtype=jnp.float32)
    out = matrix_factorization_forward(row_factors, col_factors)
    jax.block_until_ready(out)
    assert out.shape == (rows, cols)
    assert jnp.allclose(out, row_factors @ col_factors, atol=1e-4, rtol=1e-4)

    # 2) Moderate shape: tiled path, full-extent tiles (+ core split on v7x).
    rf2 = jax.random.normal(k3, (1024, 32), dtype=jnp.float32)
    cf2 = jax.random.normal(k4, (32, 1536), dtype=jnp.float32)
    out2 = matrix_factorization_forward(rf2, cf2)
    jax.block_until_ready(out2)
    assert out2.shape == (1024, 1536)
    assert jnp.allclose(out2, rf2 @ cf2, atol=1e-3, rtol=1e-4)

    # 3) Larger shape: multi-step grid with a ragged N edge (masked stores)
    #    and the redundancy-aware grid-order swap.
    rf3 = jax.random.normal(k5, (2048, 64), dtype=jnp.float32)
    cf3 = jax.random.normal(k6, (64, 2304), dtype=jnp.float32)
    out3 = matrix_factorization_forward(rf3, cf3)
    jax.block_until_ready(out3)
    assert out3.shape == (2048, 2304)
    assert jnp.allclose(out3, rf3 @ cf3, atol=1e-3, rtol=1e-4)

    print("KERNEL_OK")
</pallas_src>

<mosaic_0001>
module attributes {stable_mosaic.version = 11 : i64} {
  func.func @_mf_matmul_kernel(%arg0: memref<128x64xf32, #tpu.memory_space<vmem>>, %arg1: memref<64x256xf32, #tpu.memory_space<vmem>>, %arg2: memref<128x256xf32, #tpu.memory_space<vmem>>) attributes {dimension_semantics = [], scalar_prefetch = 0 : i64, scratch_operands = 0 : i64, tpu.core_type = #tpu.core_type<tc>} {
    %c0 = arith.constant 0 : index
    %c0_0 = arith.constant 0 : index
    %0 = vector.load %arg0[%c0, %c0_0] : memref<128x64xf32, #tpu.memory_space<vmem>>, vector<128x64xf32>
    %c0_1 = arith.constant 0 : index
    %c0_2 = arith.constant 0 : index
    %1 = vector.load %arg1[%c0_1, %c0_2] : memref<64x256xf32, #tpu.memory_space<vmem>>, vector<64x256xf32>
    %cst = arith.constant dense<0.000000e+00> : vector<128x256xf32>
    %2 = tpu.matmul %0, %1, %cst {dimension_numbers = #tpu.dot_dimension_numbers<[1], [0], [0], [1], [0, 0, 1, 1], [], []>} : vector<128x64xf32>, vector<64x256xf32>, vector<128x256xf32> -> vector<128x256xf32>
    %c0_3 = arith.constant 0 : index
    %c0_4 = arith.constant 0 : index
    %3 = vector.load %arg2[%c0_3, %c0_4] : memref<128x256xf32, #tpu.memory_space<vmem>>, vector<128x256xf32>
    tpu.vector_store %arg2[%c0_3, %c0_4], %2 {strides = array<i32>} : memref<128x256xf32, #tpu.memory_space<vmem>>, vector<128x256xf32>,
    return
  }
}

</mosaic_0001>

<bundles_post_ra>
// kernel: matrix_factorization_forward.1
= control target key start
LH: loop header
LB: loop body
LE: loop exit
PB: predicated region body
PF: predicated region fallthrough
CT: control target
= control target key end

     0   :  { %s494_s0 = inlined_call_operand.vmem [shape: f32[128,64], index: 0, kind: input, shape index: {}]   ;;  %s495_s1 = inlined_call_operand.vmem [shape: f32[64,256], index: 1, kind: input, shape index: {}]   ;;  %s496_s2 = inlined_call_operand.hbm [shape: f32[128,256], index: 2, kind: output, shape index: {}]  }
   0x1   :  { %v43_v0 = vld [vmem:[%s495_s1 + $0x78] sm:$0xff]  ;;  %v42_v1 = vld [vmem:[%s495_s1 + $0x70] sm:$0xff]  ;;  %v41_v2 = vld [vmem:[%s495_s1 + $0x68] sm:$0xff] }
   0x2   :  { %109 = vmatprep.subr.mxu0 %v43_v0  ;;  %318 = vmatprep.subr.mxu1 %v43_v0  ;;  %v40_v3 = vld [vmem:[%s495_s1 + $0x60] sm:$0xff]  ;;  %v39_v4 = vld [vmem:[%s495_s1 + $0x58] sm:$0xff]  ;;  %v38_v5 = vld [vmem:[%s495_s1 + $0x50] sm:$0xff] }
   0x3   :  { %110 = vmatpush1.msra.mxu0 %v42_v1  ;;  %326 = vmatpush1.msra.mxu1 %v42_v1  ;;  %v37_v6 = vld [vmem:[%s495_s1 + $0x48] sm:$0xff]  ;;  %v36_v7 = vld [vmem:[%s495_s1 + $0x40] sm:$0xff]  ;;  %v35_v8 = vld [vmem:[%s495_s1 + $0x38] sm:$0xff] }
   0x4   :  { %111 = vmatprep.subr.mxu0 %v41_v2  ;;  %319 = vmatprep.subr.mxu1 %v41_v2  ;;  %v34_v9 = vld [vmem:[%s495_s1 + $0x30] sm:$0xff]  ;;  %v33_v10 = vld [vmem:[%s495_s1 + $0x28] sm:$0xff]  ;;  %v32_v11 = vld [vmem:[%s495_s1 + $0x20] sm:$0xff] }
   0x5   :  { %112 = vmatpush1.msra.mxu0 %v40_v3  ;;  %327 = vmatpush1.msra.mxu1 %v40_v3  ;;  %v31_v12 = vld [vmem:[%s495_s1 + $0x18] sm:$0xff] }
   0x6   :  { %113 = vmatprep.subr.mxu0 %v39_v4  ;;  %320 = vmatprep.subr.mxu1 %v39_v4 }
   0x7   :  { %114 = vmatpush1.msra.mxu0 %v38_v5  ;;  %328 = vmatpush1.msra.mxu1 %v38_v5 }
   0x8   :  { %115 = vmatprep.subr.mxu0 %v37_v6  ;;  %321 = vmatprep.subr.mxu1 %v37_v6 }
   0x9   :  { %116 = vmatpush1.msra.mxu0 %v36_v7  ;;  %329 = vmatpush1.msra.mxu1 %v36_v7 }
   0xa   :  { %117 = vmatprep.subr.mxu0 %v35_v8  ;;  %322 = vmatprep.subr.mxu1 %v35_v8 }
   0xb   :  { %118 = vmatpush1.msra.mxu0 %v34_v9  ;;  %330 = vmatpush1.msra.mxu1 %v34_v9 }
   0xc   :  { %7 = vsyncpa [#allocation3], 0  ;;  %119 = vmatprep.subr.mxu0 %v33_v10  ;;  %323 = vmatprep.subr.mxu1 %v33_v10  ;;  %v30_v13 = vld [vmem:[%s495_s1 + $0x10] sm:$0xff]  ;;  %v29_v14 = vld [vmem:[%s495_s1 + $0x8] sm:$0xff]  ;;  %vm44_vm0 = vcmask 523264   ;;  %v360_v18 = vmov 0.0  }
   0xd   :  { %120 = vmatpush1.msra.mxu0 %v32_v11  ;;  %331 = vmatpush1.msra.mxu1 %v32_v11  ;;  %v28_v15 = vld [vmem:[%s495_s1] sm:$0xff]  ;;  %v13_v19 = vld [vmem:[%s494_s0 + $0x8] sm:$0xff]  ;;  %v14_v21 = vld [vmem:[%s494_s0 + $0x10] sm:$0xff] }
   0xe   :  { %121 = vmatprep.subr.mxu0 %v31_v12  ;;  %324 = vmatprep.subr.mxu1 %v31_v12  ;;  %v12_v16 = vld [vmem:[%s494_s0] sm:$0xff]  ;;  %v21_v20 = vld [vmem:[%s494_s0 + $0x48] sm:$0xff]  ;;  %v22_v22 = vld [vmem:[%s494_s0 + $0x50] sm:$0xff] }
   0xf   :  { %122 = vmatpush1.msra.mxu0 %v30_v13  ;;  %332 = vmatpush1.msra.mxu1 %v30_v13  ;;  %v20_v17 = vld [vmem:[%s494_s0 + $0x40] sm:$0xff]  ;;  %v15_v23 = vld [vmem:[%s494_s0 + $0x18] sm:$0xff]  ;;  %v17_v27 = vld [vmem:[%s494_s0 + $0x28] sm:$0xff] }
  0x10   :  { %123 = vmatprep.subr.mxu0 %v29_v14  ;;  %325 = vmatprep.subr.mxu1 %v29_v14  ;;  %v23_v24 = vld [vmem:[%s494_s0 + $0x58] sm:$0xff]  ;;  %v16_v25 = vld [vmem:[%s494_s0 + $0x20] sm:$0xff]  ;;  %v25_v28 = vld [vmem:[%s494_s0 + $0x68] sm:$0xff] }
  0x11   :  { %124 = vmatpush1.msra.mxu0 %v28_v15  ;;  %333 = vmatpush1.msra.mxu1 %v28_v15  ;;  %v24_v26 = vld [vmem:[%s494_s0 + $0x60] sm:$0xff]  ;;  %v18_v29 = vld [vmem:[%s494_s0 + $0x30] sm:$0xff]  ;;  %v19_v31 = vld [vmem:[%s494_s0 + $0x38] sm:$0xff] }
  0x12   :  { %157 = vmatprep.mubr.f32.mxu0 %v360_v18  ;;  %205 = vmatprep.mubr.f32.mxu1 %v360_v18  ;;  %v26_v30 = vld [vmem:[%s494_s0 + $0x70] sm:$0xff]  ;;  %v27_v32 = vld [vmem:[%s494_s0 + $0x78] sm:$0xff]  ;;  %s361_s0 = smov [#allocation2]  }
  0x13   :  { %302 = vmatmul.mubr.msk.f32.vlgmr.msra.gmra.mxu0 %vm44_vm0, %v12_v16  ;;  %310 = vmatmul.mubr.msk.f32.vlgmr.msra.gmra.mxu1 %vm44_vm0, %v20_v17  ;;  %s291_s16 = sshll.u32 %s361_s0, 4  ;;  %s292_s16 = int_to_ptr.vmem [resolvable:$true] %s291_s16 }
  0x14   :  { %163 = vmatprep.mubr.f32.mxu0 %v360_v18  ;;  %211 = vmatprep.mubr.f32.mxu1 %v360_v18  ;;  %s338_s1 = scalar_lea.vmem %s292_s16, 4096  ;;  %p343_p1 = scmp.lt.s32.totalorder %s292_s16, %s292_s16 }
  0x15   :  { %p339_p0 = scmp.ne.s32.totalorder %s292_s16, %s338_s1  ;;  %p344_p2 = scmp.lt.s32.totalorder %s338_s1, %s338_s1 }
  0x17   :  { %303 = vmatmul.mubr.msk.f32.gmra.mxu0 %vm44_vm0, %v13_v19  ;;  %311 = vmatmul.mubr.msk.f32.gmra.mxu1 %vm44_vm0, %v21_v20  ;;  %p345_p3 = por %p344_p2, %p343_p1 }
  0x18   :  { %169 = vmatprep.mubr.f32.mxu0 %v360_v18  ;;  %217 = vmatprep.mubr.f32.mxu1 %v360_v18 }
  0x19   :  { %p346_p4 = pnand %p345_p3, %p339_p0 }
  0x1b   :  { %304 = vmatmul.mubr.msk.f32.gmra.mxu0 %vm44_vm0, %v14_v21  ;;  %312 = vmatmul.mubr.msk.f32.gmra.mxu1 %vm44_vm0, %v22_v22 }
  0x1c   :  { %175 = vmatprep.mubr.f32.mxu0 %v360_v18  ;;  %223 = vmatprep.mubr.f32.mxu1 %v360_v18 }
  0x1f   :  { %305 = vmatmul.mubr.msk.f32.gmra.mxu0 %vm44_vm0, %v15_v23  ;;  %313 = vmatmul.mubr.msk.f32.gmra.mxu1 %vm44_vm0, %v23_v24 }
  0x20   :  { %181 = vmatprep.mubr.f32.mxu0 %v360_v18  ;;  %229 = vmatprep.mubr.f32.mxu1 %v360_v18 }
  0x23   :  { %306 = vmatmul.mubr.msk.f32.gmra.mxu0 %vm44_vm0, %v16_v25  ;;  %314 = vmatmul.mubr.msk.f32.gmra.mxu1 %vm44_vm0, %v24_v26 }
  0x24   :  { %187 = vmatprep.mubr.f32.mxu0 %v360_v18  ;;  %235 = vmatprep.mubr.f32.mxu1 %v360_v18 }
  0x27   :  { %307 = vmatmul.mubr.msk.f32.gmra.mxu0 %vm44_vm0, %v17_v27  ;;  %315 = vmatmul.mubr.msk.f32.gmra.mxu1 %vm44_vm0, %v25_v28 }
  0x28   :  { %193 = vmatprep.mubr.f32.mxu0 %v360_v18  ;;  %241 = vmatprep.mubr.f32.mxu1 %v360_v18 }
  0x2b   :  { %308 = vmatmul.mubr.msk.f32.gmra.mxu0 %vm44_vm0, %v18_v29  ;;  %316 = vmatmul.mubr.msk.f32.gmra.mxu1 %vm44_vm0, %v26_v30 }
  0x2c   :  { %199 = vmatprep.mubr.f32.mxu0 %v360_v18  ;;  %247 = vmatprep.mubr.f32.mxu1 %v360_v18 }
  0x2f   :  { %309 = vmatmul.mubr.msk.f32.gmra.mxu0 %vm44_vm0, %v19_v31  ;;  %317 = vmatmul.mubr.msk.f32.gmra.mxu1 %vm44_vm0, %v27_v32 }
  0xd3   :  { %v159_v33 = vpop.f32.mrf.mxu0  ;;  %v207_v34 = vpop.f32.mrf.mxu1 }
  0xd4   :  { %254 = vst [vmem:[#allocation2] sm:$0xff] %v159_v33  ;;  %270 = vst [vmem:[#allocation2 + $0x80] sm:$0xff] %v207_v34 }
  0xd5   :  { %v161_v35 = vpop.f32.mrf.mxu0  ;;  %v209_v36 = vpop.f32.mrf.mxu1 }
  0xd6   :  { %255 = vst [vmem:[#allocation2 + $0x8] sm:$0xff] %v161_v35  ;;  %271 = vst [vmem:[#allocation2 + $0x88] sm:$0xff] %v209_v36 }
  0xd7   :  { %v165_v37 = vpop.f32.mrf.mxu0  ;;  %v213_v38 = vpop.f32.mrf.mxu1 }
  0xd8   :  { %256 = vst [vmem:[#allocation2 + $0x10] sm:$0xff] %v165_v37  ;;  %272 = vst [vmem:[#allocation2 + $0x90] sm:$0xff] %v213_v38 }
  0xd9   :  { %v167_v39 = vpop.f32.mrf.mxu0  ;;  %v215_v40 = vpop.f32.mrf.mxu1 }
  0xda   :  { %257 = vst [vmem:[#allocation2 + $0x18] sm:$0xff] %v167_v39  ;;  %273 = vst [vmem:[#allocation2 + $0x98] sm:$0xff] %v215_v40 }
  0xdb   :  { %v171_v41 = vpop.f32.mrf.mxu0  ;;  %v219_v42 = vpop.f32.mrf.mxu1 }
  0xdc   :  { %258 = vst [vmem:[#allocation2 + $0x20] sm:$0xff] %v171_v41  ;;  %274 = vst [vmem:[#allocation2 + $0xa0] sm:$0xff] %v219_v42 }
  0xdd   :  { %v173_v43 = vpop.f32.mrf.mxu0  ;;  %v221_v44 = vpop.f32.mrf.mxu1 }
  0xde   :  { %259 = vst [vmem:[#allocation2 + $0x28] sm:$0xff] %v173_v43  ;;  %275 = vst [vmem:[#allocation2 + $0xa8] sm:$0xff] %v221_v44 }
  0xdf   :  { %v177_v45 = vpop.f32.mrf.mxu0  ;;  %v225_v46 = vpop.f32.mrf.mxu1 }
  0xe0   :  { %260 = vst [vmem:[#allocation2 + $0x30] sm:$0xff] %v177_v45  ;;  %276 = vst [vmem:[#allocation2 + $0xb0] sm:$0xff] %v225_v46 }
  0xe1   :  { %v179_v47 = vpop.f32.mrf.mxu0  ;;  %v227_v48 = vpop.f32.mrf.mxu1 }
  0xe2   :  { %261 = vst [vmem:[#allocation2 + $0x38] sm:$0xff] %v179_v47  ;;  %277 = vst [vmem:[#allocation2 + $0xb8] sm:$0xff] %v227_v48 }
  0xe3   :  { %v183_v49 = vpop.f32.mrf.mxu0  ;;  %v231_v50 = vpop.f32.mrf.mxu1 }
  0xe4   :  { %262 = vst [vmem:[#allocation2 + $0x40] sm:$0xff] %v183_v49  ;;  %278 = vst [vmem:[#allocation2 + $0xc0] sm:$0xff] %v231_v50 }
  0xe5   :  { %v185_v51 = vpop.f32.mrf.mxu0  ;;  %v233_v52 = vpop.f32.mrf.mxu1 }
  0xe6   :  { %263 = vst [vmem:[#allocation2 + $0x48] sm:$0xff] %v185_v51  ;;  %279 = vst [vmem:[#allocation2 + $0xc8] sm:$0xff] %v233_v52 }
  0xe7   :  { %v189_v53 = vpop.f32.mrf.mxu0  ;;  %v237_v54 = vpop.f32.mrf.mxu1 }
  0xe8   :  { %264 = vst [vmem:[#allocation2 + $0x50] sm:$0xff] %v189_v53  ;;  %280 = vst [vmem:[#allocation2 + $0xd0] sm:$0xff] %v237_v54 }
  0xe9   :  { %v191_v55 = vpop.f32.mrf.mxu0  ;;  %v239_v56 = vpop.f32.mrf.mxu1 }
  0xea   :  { %265 = vst [vmem:[#allocation2 + $0x58] sm:$0xff] %v191_v55  ;;  %281 = vst [vmem:[#allocation2 + $0xd8] sm:$0xff] %v239_v56 }
  0xeb   :  { %v195_v57 = vpop.f32.mrf.mxu0  ;;  %v243_v58 = vpop.f32.mrf.mxu1 }
  0xec   :  { %266 = vst [vmem:[#allocation2 + $0x60] sm:$0xff] %v195_v57  ;;  %282 = vst [vmem:[#allocation2 + $0xe0] sm:$0xff] %v243_v58 }
  0xed   :  { %v197_v59 = vpop.f32.mrf.mxu0  ;;  %v245_v60 = vpop.f32.mrf.mxu1 }
  0xee   :  { %267 = vst [vmem:[#allocation2 + $0x68] sm:$0xff] %v197_v59  ;;  %283 = vst [vmem:[#allocation2 + $0xe8] sm:$0xff] %v245_v60 }
  0xef   :  { %v201_v61 = vpop.f32.mrf.mxu0  ;;  %v249_v62 = vpop.f32.mrf.mxu1 }
  0xf0   :  { %268 = vst [vmem:[#allocation2 + $0x70] sm:$0xff] %v201_v61  ;;  %284 = vst [vmem:[#allocation2 + $0xf0] sm:$0xff] %v249_v62 }
  0xf1   :  { %v203_v63 = vpop.f32.mrf.mxu0  ;;  %v251_v0 = vpop.f32.mrf.mxu1 }
  0xf2   :  { %269 = vst [vmem:[#allocation2 + $0x78] sm:$0xff] %v203_v63  ;;  %285 = vst [vmem:[#allocation2 + $0xf8] sm:$0xff] %v251_v0 }
  0xf3   :  { %349 = shalt.err (!%p346_p4)
}
  0xf4   :  { %s362_s17 = smov 256   ;;  %s363_s18 = smov 16  }
  0xf5   :  { %297 = dma.vmem_to_hbm [thread:$0]  %s292_s16, 4096, %s496_s2, [#allocation3], %s362_s17, %s362_s17, %s363_s18  }
  0xf6   :  { %358 = dma.done.wait [#allocation3], 4096  }
  0xf7   :  { %359 = vsyncadd [#allocation3], 4294963200 }
  0xf8   :  { %301 = vsyncpa [#allocation3], 1 }

</bundles_post_ra>
